<compile_context>
chip_gen: v5e
topology: v5e:2x2
jax: 0.10.0
libtpu: 0.0.40
codegen_flags: <defaults>
</compile_context>

<pallas_src>
import functools

import jax
import jax.numpy as jnp
import numpy as np
from jax.experimental import pallas as pl
from jax.experimental.pallas import tpu as pltpu


def _round_up(v, m):
    return ((v + m - 1) // m) * m


def _exp_dtype_for_backend():
    # bf16 EUP (exp) path exists on v6e / v7x; keep f32 on v5e and older chips.
    try:
        kind = jax.devices()[0].device_kind.lower()
    except Exception:
        return jnp.float32
    if any(tag in kind for tag in ("v2", "v3", "v4", "v5")):
        return jnp.float32
    return jnp.bfloat16


def mhsa_head_kernel(x_ref, w_ref, pos_ref, o_ref, *, d, n_valid, exp_dtype):
    # x_ref:   (1, Ca, Np) bf16  -- one batch element: channels, ones row, zero pad rows
    # w_ref:   (1, R,  Ca) bf16  -- per-head [Wq|bq; Wk|bk; Wv|bv; 0..0|1; zero pad rows]
    # pos_ref: (1, d,  Np) bf16  -- per-head rel_h + rel_w
    # o_ref:   (1, d,  Np)
    Np = pos_ref.shape[-1]

    # Per-head stacked QKV projection (bias folded, trailing ones row). MXU,
    # f32 accumulation; one hoisted cast back to bf16 for the attention matmuls.
    qkv = jnp.dot(w_ref[0], x_ref[0], preferred_element_type=jnp.float32)   # (R, Np)
    qkv_bf = qkv.astype(jnp.bfloat16)

    q_bf = qkv_bf[0:d]              # (d, Np)
    k_bf = qkv_bf[d:2 * d]          # (d, Np)
    v1_bf = qkv_bf[2 * d:]          # (R-2d, Np): v rows, all-ones row, zero pad rows

    # energy[n, m] = sum_d q[d,n] k[d,m] + sum_d pos[d,n] q[d,m]
    # Two MXU dot_generals (contract dim 0), summed in f32 (cheap VPU filler;
    # in-place MRB accumulate on v7x). No concatenates, no explicit transposes.
    cc = jax.lax.dot_general(q_bf, k_bf, (((0,), (0,)), ((), ())),
                             preferred_element_type=jnp.float32)
    cp = jax.lax.dot_general(pos_ref[0], q_bf, (((0,), (0,)), ((), ())),
                             preferred_element_type=jnp.float32)
    energy = cc + cp                                                        # (Np, Np) f32

    # Mask padded key columns (f32, before the row max).
    if Np > n_valid:
        key_ids = jax.lax.broadcasted_iota(jnp.int32, (1, Np), 1)
        energy = jnp.where(key_ids < n_valid, energy, jnp.float32(-1e30))

    # Numerically-stable softmax with DEFERRED normalization: only exp here;
    # the denominator comes out of the PV matmul via the ones row of v1.
    m = jnp.max(energy, axis=-1, keepdims=True)                             # f32 (XLU)
    e = jnp.exp((energy - m).astype(exp_dtype)).astype(jnp.bfloat16)        # (Np, Np) bf16

    # out_aug[r, n] = sum_m v1[r, m] * e[n, m]; row d is sum_m e[n, m].
    out_aug = jax.lax.dot_general(v1_bf, e, (((1,), (1,)), ((), ())),
                                  preferred_element_type=jnp.float32)       # (R-2d, Np)
    inv = pl.reciprocal(out_aug[d:d + 1], approx=True)                      # (1, Np), EUP
    o_ref[0] = (out_aug[0:d] * inv).astype(o_ref.dtype)


def mhsa_forward(x, params, heads):
    B, C, W, H = x.shape
    assert C % heads == 0
    d = C // heads
    assert d % 8 == 0, "head dim must be a multiple of 8 (TPU sublane) for per-head output blocks"
    N = W * H
    Np = _round_up(N, 128)        # lane-dense padded spatial
    Ca = _round_up(C + 1, 8)      # channels + ones row, sublane-aligned
    R = _round_up(3 * d + 1, 8)   # per-head weight rows (q, k, v, ones), sublane-aligned

    # x -> (B, Ca, Np) bf16: padded spatial, a ones row (feeds the folded bias
    # and the softmax-denominator helper row), zero rows up to Ca.
    x_flat = x.reshape(B, C, N)
    if Np != N:
        x_flat = jnp.pad(x_flat, ((0, 0), (0, 0), (0, Np - N)))
    x_aug = jnp.concatenate(
        [x_flat, jnp.ones((B, 1, Np), x.dtype),
         jnp.zeros((B, Ca - C - 1, Np), x.dtype)], axis=1).astype(jnp.bfloat16)

    # Per-head weight stack (heads, R, Ca) bf16:
    #   rows [0, 3d)  : [Wq_h | bq_h], [Wk_h | bk_h], [Wv_h | bv_h]
    #   row  3d       : [0 ... 0 | 1]  -> projection emits an all-ones row
    #   rows (3d, R)  : zeros (alignment padding)
    def heads_of(w):
        return w.reshape(heads, d, C)

    w_rows = jnp.concatenate([heads_of(params["wq"]), heads_of(params["wk"]),
                              heads_of(params["wv"])], axis=1)              # (heads, 3d, C)
    b_rows = jnp.concatenate([params["bq"].reshape(heads, d),
                              params["bk"].reshape(heads, d),
                              params["bv"].reshape(heads, d)], axis=1)[..., None]
    w_aug = jnp.concatenate([w_rows, b_rows], axis=2)                       # (heads, 3d, C+1)
    ones_row = jnp.concatenate([jnp.zeros((heads, 1, C), w_aug.dtype),
                                jnp.ones((heads, 1, 1), w_aug.dtype)], axis=2)
    w_all = jnp.concatenate([w_aug, ones_row], axis=1)                      # (heads, 3d+1, C+1)
    w_all = jnp.pad(w_all, ((0, 0), (0, R - (3 * d + 1)), (0, Ca - (C + 1))))
    w_all = w_all.astype(jnp.bfloat16)

    # Relative-position term per head, padded & bf16.
    pos = (params["rel_h"] + params["rel_w"]).reshape(heads, d, N)
    if Np != N:
        pos = jnp.pad(pos, ((0, 0), (0, 0), (0, Np - N)))
    pos = pos.astype(jnp.bfloat16)

    kernel = functools.partial(mhsa_head_kernel, d=d, n_valid=N,
                               exp_dtype=_exp_dtype_for_backend())

    out = pl.pallas_call(
        kernel,
        out_shape=jax.ShapeDtypeStruct((B, C, Np), x.dtype),
        grid_spec=pltpu.PrefetchScalarGridSpec(
            num_scalar_prefetch=0,
            grid=(B, heads),   # head axis innermost: x block reused across heads
            in_specs=[
                pl.BlockSpec((1, Ca, Np), lambda b, h: (b, 0, 0)),          # x (+ones row)
                pl.BlockSpec((1, R, Ca), lambda b, h: (h, 0, 0)),           # per-head W
                pl.BlockSpec((1, d, Np), lambda b, h: (h, 0, 0)),           # per-head rel pos
            ],
            out_specs=pl.BlockSpec((1, d, Np), lambda b, h: (b, h, 0)),
        ),
        compiler_params=pltpu.CompilerParams(
            dimension_semantics=("parallel", "parallel"),
            # Per-step footprint is O(Np^2) f32 for one head's scores plus small
            # double-buffered inputs; 48 MiB stays inside v7x's 64 MiB physical
            # VMEM and is generous for v5e/v6e.
            vmem_limit_bytes=48 * 1024 * 1024),
    )(x_aug, w_all, pos)

    return out[:, :, :N].reshape(B, C, W, H)


def mhsa_reference(x, params, heads):
    # Pure-JAX reference mirroring the PyTorch forward math with the kernel's
    # declared matmul precision policy (bf16 MXU operands incl. bias, f32
    # accumulation, f32 softmax) so the comparison isolates kernel structure.
    B, C, W, H = x.shape
    d = C // heads
    N = W * H
    xf = x.reshape(B, C, N)
    bx = xf.astype(jnp.bfloat16)

    def proj(w, b):
        y = jnp.einsum("oc,bcn->bon", w.astype(jnp.bfloat16), bx,
                       preferred_element_type=jnp.float32)
        y = y + b.astype(jnp.bfloat16).astype(jnp.float32)[None, :, None]
        return y.reshape(B, heads, d, N)

    q = proj(params["wq"], params["bq"])
    k = proj(params["wk"], params["bk"])
    v = proj(params["wv"], params["bv"])

    qb = q.astype(jnp.bfloat16)
    kb = k.astype(jnp.bfloat16)
    cc = jnp.einsum("bhdn,bhdm->bhnm", qb, kb,
                    preferred_element_type=jnp.float32)
    pos = (params["rel_h"] + params["rel_w"]).reshape(1, heads, d, N)
    cp = jnp.einsum("ohdn,bhdm->bhnm", pos.astype(jnp.bfloat16), qb,
                    preferred_element_type=jnp.float32)
    energy = cc + cp
    attn = jax.nn.softmax(energy, axis=-1)
    out = jnp.einsum("bhdm,bhnm->bhdn", v.astype(jnp.bfloat16),
                     attn.astype(jnp.bfloat16),
                     preferred_element_type=jnp.float32)
    return out.reshape(B, C, W, H).astype(x.dtype)


def init_params(key, n_dims, width, height, heads):
    d = n_dims // heads
    ks = jax.random.split(key, 8)
    scale = 1.0 / np.sqrt(n_dims)
    return {
        # 1x1 conv weights stored as (C_out, C_in); bias (C_out,)
        "wq": jax.random.normal(ks[0], (n_dims, n_dims), jnp.float32) * scale,
        "bq": jax.random.normal(ks[1], (n_dims,), jnp.float32) * 0.1,
        "wk": jax.random.normal(ks[2], (n_dims, n_dims), jnp.float32) * scale,
        "bk": jax.random.normal(ks[3], (n_dims,), jnp.float32) * 0.1,
        "wv": jax.random.normal(ks[4], (n_dims, n_dims), jnp.float32) * scale,
        "bv": jax.random.normal(ks[5], (n_dims,), jnp.float32) * 0.1,
        "rel_h": jax.random.normal(ks[6], (1, heads, d, 1, height), jnp.float32),
        "rel_w": jax.random.normal(ks[7], (1, heads, d, width, 1), jnp.float32),
    }


if __name__ == "__main__":
    B, C, W, H, heads = 2, 32, 8, 8, 4          # N = 64 -> padded to 128 lanes
    key = jax.random.PRNGKey(0)
    kx, kp = jax.random.split(key)
    x = jax.random.normal(kx, (B, C, W, H), jnp.float32)
    params = init_params(kp, C, W, H, heads)

    out = mhsa_forward(x, params, heads)
    out = jax.block_until_ready(out)

    ref = mhsa_reference(x, params, heads)
    # bf16 MXU operands + bf16 exp / deferred normalization on v6e+ (per perf
    # guidance) -> tolerance relaxed vs a pure-f32 comparison.
    np.testing.assert_allclose(np.asarray(out), np.asarray(ref),
                               rtol=3e-2, atol=3e-2)
    print("KERNEL_OK")
</pallas_src>

<mosaic_0001>
module attributes {stable_mosaic.version = 11 : i64} {
  func.func @mhsa_head_kernel(%arg0: i32, %arg1: i32, %arg2: memref<1x40x128xbf16, #tpu.memory_space<vmem>>, %arg3: memref<1x32x40xbf16, #tpu.memory_space<vmem>>, %arg4: memref<1x8x128xbf16, #tpu.memory_space<vmem>>, %arg5: memref<1x8x128xf32, #tpu.memory_space<vmem>>) attributes {dimension_semantics = [#tpu.dimension_semantics<parallel>, #tpu.dimension_semantics<parallel>], iteration_bounds = array<i64: 2, 4>, scalar_prefetch = 0 : i64, scratch_operands = 0 : i64, tpu.core_type = #tpu.core_type<tc>, window_params = [{transform_indices = @transform_0, window_bounds = array<i64: 1, 40, 128>}, {transform_indices = @transform_1, window_bounds = array<i64: 1, 32, 40>}, {transform_indices = @transform_2, window_bounds = array<i64: 1, 8, 128>}, {transform_indices = @transform_3, window_bounds = array<i64: 1, 8, 128>}]} {
    %c0 = arith.constant 0 : index
    %c0_0 = arith.constant 0 : index
    %c0_1 = arith.constant 0 : index
    %0 = vector.load %arg3[%c0, %c0_0, %c0_1] : memref<1x32x40xbf16, #tpu.memory_space<vmem>>, vector<1x32x40xbf16>
    %1 = vector.shape_cast %0 : vector<1x32x40xbf16> to vector<32x40xbf16>
    %c0_2 = arith.constant 0 : index
    %c0_3 = arith.constant 0 : index
    %c0_4 = arith.constant 0 : index
    %2 = vector.load %arg2[%c0_2, %c0_3, %c0_4] : memref<1x40x128xbf16, #tpu.memory_space<vmem>>, vector<1x40x128xbf16>
    %3 = vector.shape_cast %2 : vector<1x40x128xbf16> to vector<40x128xbf16>
    %cst = arith.constant dense<0.000000e+00> : vector<32x128xf32>
    %4 = tpu.matmul %1, %3, %cst {dimension_numbers = #tpu.dot_dimension_numbers<[1], [0], [0], [1], [0, 0, 1, 1], [], []>} : vector<32x40xbf16>, vector<40x128xbf16>, vector<32x128xf32> -> vector<32x128xf32>
    %5 = arith.truncf %4 : vector<32x128xf32> to vector<32x128xbf16>
    %6 = vector.extract_strided_slice %5 {offsets = [0, 0], sizes = [8, 128], strides = [1, 1]} : vector<32x128xbf16> to vector<8x128xbf16>
    %7 = vector.extract_strided_slice %5 {offsets = [8, 0], sizes = [8, 128], strides = [1, 1]} : vector<32x128xbf16> to vector<8x128xbf16>
    %8 = vector.extract_strided_slice %5 {offsets = [16, 0], sizes = [16, 128], strides = [1, 1]} : vector<32x128xbf16> to vector<16x128xbf16>
    %cst_5 = arith.constant dense<0.000000e+00> : vector<128x128xf32>
    %9 = tpu.matmul %6, %7, %cst_5 {dimension_numbers = #tpu.dot_dimension_numbers<[0], [0], [1], [1], [0, 1, 1, 1], [], []>} : vector<8x128xbf16>, vector<8x128xbf16>, vector<128x128xf32> -> vector<128x128xf32>
    %c0_6 = arith.constant 0 : index
    %c0_7 = arith.constant 0 : index
    %c0_8 = arith.constant 0 : index
    %10 = vector.load %arg4[%c0_6, %c0_7, %c0_8] : memref<1x8x128xbf16, #tpu.memory_space<vmem>>, vector<1x8x128xbf16>
    %11 = vector.shape_cast %10 : vector<1x8x128xbf16> to vector<8x128xbf16>
    %cst_9 = arith.constant dense<0.000000e+00> : vector<128x128xf32>
    %12 = tpu.matmul %11, %6, %cst_9 {dimension_numbers = #tpu.dot_dimension_numbers<[0], [0], [1], [1], [0, 1, 1, 1], [], []>} : vector<8x128xbf16>, vector<8x128xbf16>, vector<128x128xf32> -> vector<128x128xf32>
    %13 = arith.addf %9, %12 : vector<128x128xf32>
    %14 = tpu.iota {dimensions = array<i32: 1>} : vector<1x128xi32>
    %c64_i32 = arith.constant 64 : i32
    %15 = vector.broadcast %c64_i32 : i32 to vector<1x128xi32>
    %16 = arith.cmpi slt, %14, %15 : vector<1x128xi32>
    %cst_10 = arith.constant -1.000000e+30 : f32
    %17 = vector.shape_cast %16 : vector<1x128xi1> to vector<1x128xi1>
    %18 = vector.broadcast %17 : vector<1x128xi1> to vector<128x128xi1>
    %19 = vector.broadcast %cst_10 : f32 to vector<128x128xf32>
    %20 = arith.select %18, %13, %19 : vector<128x128xi1>, vector<128x128xf32>
    %cst_11 = arith.constant dense<0xFF800000> : vector<128xf32>
    %21 = vector.multi_reduction <maximumf>, %20, %cst_11 [1] : vector<128x128xf32> to vector<128xf32>
    %22 = vector.shape_cast %21 : vector<128xf32> to vector<128x1xf32>
    %23 = vector.broadcast %22 : vector<128x1xf32> to vector<128x128xf32>
    %24 = arith.subf %20, %23 : vector<128x128xf32>
    %25 = arith.truncf %24 : vector<128x128xf32> to vector<128x128xbf16>
    %26 = math.exp %25 : vector<128x128xbf16>
    %cst_12 = arith.constant dense<0.000000e+00> : vector<16x128xf32>
    %27 = tpu.matmul %8, %26, %cst_12 {dimension_numbers = #tpu.dot_dimension_numbers<[1], [1], [0], [0], [0, 0, 1, 0], [], []>} : vector<16x128xbf16>, vector<128x128xbf16>, vector<16x128xf32> -> vector<16x128xf32>
    %28 = vector.extract_strided_slice %27 {offsets = [8, 0], sizes = [1, 128], strides = [1, 1]} : vector<16x128xf32> to vector<1x128xf32>
    %29 = tpu.reciprocal %28 {approx = true} : vector<1x128xf32> -> vector<1x128xf32>
    %30 = vector.extract_strided_slice %27 {offsets = [0, 0], sizes = [8, 128], strides = [1, 1]} : vector<16x128xf32> to vector<8x128xf32>
    %31 = vector.broadcast %29 : vector<1x128xf32> to vector<8x128xf32>
    %32 = arith.mulf %30, %31 : vector<8x128xf32>
    %c0_13 = arith.constant 0 : index
    %c0_14 = arith.constant 0 : index
    %c0_15 = arith.constant 0 : index
    %33 = vector.load %arg5[%c0_13, %c0_14, %c0_15] : memref<1x8x128xf32, #tpu.memory_space<vmem>>, vector<1x8x128xf32>
    %34 = vector.shape_cast %33 : vector<1x8x128xf32> to vector<8x128xf32>
    %35 = vector.shape_cast %32 : vector<8x128xf32> to vector<1x8x128xf32>
    tpu.vector_store %arg5[%c0_13, %c0_14, %c0_15], %35 {strides = array<i32>} : memref<1x8x128xf32, #tpu.memory_space<vmem>>, vector<1x8x128xf32>,
    return
  }
  func.func @transform_0(%arg0: i32, %arg1: i32) -> (i32, i32, i32) {
    %c0_i32 = arith.constant 0 : i32
    %c0_i32_0 = arith.constant 0 : i32
    %c0_i32_1 = arith.constant 0 : i32
    return %arg0, %c0_i32, %c0_i32_0 : i32, i32, i32
  }
  func.func @transform_1(%arg0: i32, %arg1: i32) -> (i32, i32, i32) {
    %c0_i32 = arith.constant 0 : i32
    %c0_i32_0 = arith.constant 0 : i32
    %c0_i32_1 = arith.constant 0 : i32
    return %arg1, %c0_i32, %c0_i32_0 : i32, i32, i32
  }
  func.func @transform_2(%arg0: i32, %arg1: i32) -> (i32, i32, i32) {
    %c0_i32 = arith.constant 0 : i32
    %c0_i32_0 = arith.constant 0 : i32
    %c0_i32_1 = arith.constant 0 : i32
    return %arg1, %c0_i32, %c0_i32_0 : i32, i32, i32
  }
  func.func @transform_3(%arg0: i32, %arg1: i32) -> (i32, i32, i32) {
    %c0_i32 = arith.constant 0 : i32
    %c0_i32_0 = arith.constant 0 : i32
    return %arg0, %arg1, %c0_i32 : i32, i32, i32
  }
}

</mosaic_0001>

<bundles_post_ra>
// kernel: tpu_custom_call.1
= control target key start
LH: loop header
LB: loop body
LE: loop exit
PB: predicated region body
PF: predicated region fallthrough
CT: control target
= control target key end

     0   :  { %s1748_s0 = inlined_call_operand.hbm [shape: bf16[2,40,128], index: 0, kind: input, shape index: {}]   ;;  %s1749_s1 = inlined_call_operand.hbm [shape: bf16[4,32,40], index: 1, kind: input, shape index: {}]   ;;  %s1750_s2 = inlined_call_operand.hbm [shape: bf16[4,8,128], index: 2, kind: input, shape index: {}]   ;;  %s1751_s3 = inlined_call_operand.hbm [shape: f32[2,32,128], index: 3, kind: output, shape index: {}]  }
   0x1   :  { %1769 = sst [smem:[#allocation26_spill]] %s1749_s1 }
   0x2   :  { %1770 = sst [smem:[#allocation27_spill]] %s1751_s3 }
   0x3   :  { %8 = vsyncpa [#allocation3], 0 }
   0x4   :  { %10 = vsyncpa [#allocation3 + $0x1], 0 }
   0x5   :  { %11 = vsyncpa [#allocation6], 0 }
   0x6   :  { %13 = vsyncpa [#allocation6 + $0x1], 0 }
   0x7   :  { %14 = vsyncpa [#allocation4], 0 }
   0x8   :  { %16 = vsyncpa [#allocation4 + $0x1], 0  ;;  %s1356_s12 = smov 0   ;;  %s1358_s13 = smov 0  }
   0x9   :  { %s1360_s14 = smov 0   ;;  %s1362_s15 = smov 0  }
   0xa   :  { %s1364_s16 = smov 0   ;;  %s1366_s17 = smov 0  }
   0xb   :  { %s1368_s18 = smov 0   ;;  %s1370_s19 = smov 0  }
   0xc   :  { %s1372_s20 = smov 0   ;;  %s1374_s21 = smov 0  }
   0xd   :  { %s1376_s22 = smov 0   ;;  %s1378_s23 = smov 0  }
   0xe   :  { %s1380_s24 = smov 0   ;;  %s1382_s25 = smov 0  }
   0xf LB: > { %1771 = sst [smem:[#allocation12_spill]] %s1280_s12  ;;  %s1425_s26 = sadd.s32 4294967295, %s1332_s25   ;;  %s1332_s25 = sphi %s1382_s25, %s22_s25   ;;  %s1328_s24 = sphi %s1380_s24, %s1816_s24   ;;  %s1324_s23 = sphi %s1378_s23, %s1822_s23   ;;  %s1320_s22 = sphi %s1376_s22, %s1814_s22   ;;  %s1316_s21 = sphi %s1374_s21, %s1821_s21   ;;  %s1312_s20 = sphi %s1372_s20, %s1813_s20   ;;  %s1308_s19 = sphi %s1370_s19, %s1820_s19   ;;  %s1304_s18 = sphi %s1368_s18, %s1819_s18   ;;  %s1300_s17 = sphi %s1366_s17, %s1811_s17   ;;  %s1296_s16 = sphi %s1364_s16, %s1818_s16   ;;  %s1292_s15 = sphi %s1362_s15, %s1817_s15   ;;  %s1288_s14 = sphi %s1360_s14, %s1809_s14   ;;  %s1284_s13 = sphi %s1358_s13, %s1808_s13   ;;  %s1280_s12 = sphi %s1356_s12, %s1807_s12  }
  0x10   : > { %1772 = sst [smem:[#allocation13_spill]] %s1284_s13  ;;  %s31_s27 = sadd.s32 1, %s1324_s23 }
  0x11   : > { %1773 = sst [smem:[#allocation14_spill]] %s1288_s14  ;;  %p1428_p0 = scmp.ge.s32.totalorder %s31_s27, 4 }
  0x12   : > { %1774 = sst [smem:[#allocation15_spill]] %s1300_s17  ;;  %p49_p1 = scmp.eq.s32.totalorder %s1332_s25, 0 }
  0x13   : > { %1775 = sst [smem:[#allocation16_spill]] %s1312_s20  ;;  %p55_p2 = scmp.eq.s32.totalorder %s1425_s26, 0 }
  0x14   : > { %1776 = sst [smem:[#allocation17_spill]] %s1316_s21  ;;  %s67_s29 = sadd.s32 1, %s1300_s17 }
  0x15   : > { %1777 = sst [smem:[#allocation18_spill]] %s1328_s24  ;;  %s1824_s27 = smov (%p1428_p0, %s31_s27), 0 }
  0x16   : > { %1778 = sst [smem:[#allocation19_spill]] %s1332_s25  ;;  %p74_p3 = scmp.ne.s32.totalorder %s1300_s17, %s1296_s16 }
  0x17   : > { %1780 = sst [smem:[#allocation20_spill]] %s1824_s27  ;;  %p80_p4 = scmp.ne.s32.totalorder %s1296_s16, %s1292_s15 }
  0x18   : > { %s1444_s30 = ssub.s32 %s1324_s23, %s1824_s27  ;;  %p132_p5 = scmp.eq.s32.totalorder %s1425_s26, 7 }
  0x19   : > { %p65_p6 = scmp.eq.s32.totalorder %s1444_s30, 0  ;;  %p1450_p7 = por %p74_p3, %p49_p1 }
  0x1a   : > { %p1456_p8 = por %p80_p4, %p55_p2  ;;  %p1755_p9 = scmp.lt.s32.totalorder %s1332_s25, 8 }
  0x1b   : > { %s1461_s6 = scalar_select %p65_p6, %s1300_s17, %s67_s29  }
  0x1c   : > { %s1782_s5 = scalar_select %p1456_p8, 1, 0 }
  0x1d   : > { %1783 = sst [smem:[#allocation21_spill]] %s1461_s6  ;;  %s180_s7 = sand.u32 1, %s1332_s25  }
  0x1e   : > { %s1754_s8 = sand.u32 1, %s1300_s17   ;;  %s892_s10 = sshll.u32 %s1324_s23, 4 }
  0x1f   : > { %s844_s9 = sshll.u32 %s1754_s8, 4  ;;  %s1784_s1 = sld [smem:[#allocation26_spill]] }
  0x20   : > { %s184_s21 = scalar_lea.vmem [#allocation5], %s844_s9  ;;  %p1476_p10 = pnand %p1755_p9, %p1450_p7 }
  0x21   : > { %s192_s29 = sshll.u32 %s184_s21, 4  ;;  %p849_p11 = scmp.ge.s32.totalorder %s1332_s25, 1  ;;  %s193_s29 = int_to_ptr.vmem [resolvable:$true] %s192_s29 }
  0x22   : > { %p219_p12 = scmp.lt.s32.totalorder %s1332_s25, 9  ;;  %s1757_s21 = smov 64  }
  0x23   : > { %s1758_s4 = smov 4   ;;  %s41_s11 = sadd.s32 1, %s1312_s20 }
  0x24   : > { %p1490_p13 = pnand %p849_p11, %p219_p12  ;;  %p48_p3 = scmp.ne.s32.totalorder %s1312_s20, %s1308_s19 }
  0x25   : > { %s189_s27 = scalar_lea.hbm %s1784_s1, %s892_s10  ;;  %s840_s10 = sadd.s32 4294967294, %s1332_s25  }
  0x26   : > { %s190_s3 = sshll.u32 %s189_s27, 4  ;;  %s1482_s27 = scalar_lea.sflag [#allocation6], %s180_s7  ;;  %s191_s3 = int_to_ptr.hbm [resolvable:$true] %s190_s3 }
  0x27   : > { %916 = dma.hbm_to_vmem [thread:$0]  (!%p1476_p10), %s191_s3, 256, %s193_s29, %s1482_s27, %s1757_s21, %s1757_s21, %s1758_s4  }
  0x28   : > { %s34_s7 = sadd.s32 1, %s1328_s24  ;;  %p54_p4 = scmp.ne.s32.totalorder %s1308_s19, %s1304_s18 }
  0x29   : > { %s1826_s7 = smov (!%p1428_p0, %s34_s7), %s1328_s24  ;;  %s121_s15 = sadd.s32 1, %s1288_s14 }
  0x2a   : > { %p36_p6 = scmp.ge.s32.totalorder %s1826_s7, 2  ;;  %p1507_p7 = por %p49_p1, %p48_p3 }
  0x2b   : > { %p1513_p11 = por %p55_p2, %p54_p4  ;;  %p131_p0 = scmp.ne.s32.totalorder %s1288_s14, %s1284_s13 }
  0x2c   : > { %s1828_s7 = smov (%p36_p6, %s1826_s7), 0  ;;  %p137_p12 = scmp.ne.s32.totalorder %s1284_s13, %s1280_s12 }
  0x2d   : > { %1789 = sst [smem:[#allocation22_spill]] %s1828_s7  ;;  %s38_s18 = ssub.s32 %s1328_s24, %s1828_s7 }
  0x2e   : > { %p138_p9 = scmp.eq.s32.totalorder %s840_s10, 7  ;;  %p39_p1 = scmp.eq.s32.totalorder %s38_s18, 0 }
  0x2f   : > { %s118_s28 = sor.u32 %s1444_s30, %s38_s18  ;;  %p1528_p8 = por %p132_p5, %p131_p0 }
  0x30   : > { %p119_p3 = scmp.eq.s32.totalorder %s118_s28, 0  ;;  %p1538_p2 = por %p138_p9, %p137_p12 }
  0x31   : > { %s1533_s4 = scalar_select %p39_p1, %s1312_s20, %s41_s11  }
  0x32   : > { %s1536_s1 = scalar_select %p119_p3, %s1288_s14, %s121_s15  }
  0x33   : > { %1791 = sst [smem:[#allocation23_spill]] %s1533_s4  ;;  %s158_s12 = sand.u32 1, %s1312_s20  }
  0x34   : > { %1792 = sst [smem:[#allocation24_spill]] %s1536_s1  ;;  %s899_s7 = smul.u32 20, %s158_s12 }
  0x35   : > { %s1793_s6 = scalar_select %p1538_p2, 1, 0 }
  0x36   : > { %s900_s10 = smul.u32 20, %s1328_s24  ;;  %p1795_p4 = scmp.lt.s32.totalorder %s1332_s25, 8 }
  0x37   : > { %1794 = sst [smem:[#allocation25_spill]] %s1793_s6  ;;  %s1796_s30 = sand.u32 1, %s1300_s17  }
  0x38   : > { %p911_p6 = pnand %p1795_p4, %p1507_p7  ;;  %s847_s18 = sshll.u32 %s1796_s30, 2 }
  0x39   : > { %s167_s11 = scalar_lea.hbm %s1748_s0, %s900_s10  ;;  %s162_s15 = scalar_lea.vmem [#allocation2], %s899_s7 }
  0x3a   : > { %s170_s4 = sshll.u32 %s162_s15, 4  ;;  %s168_s1 = sshll.u32 %s167_s11, 4  ;;  %s171_s4 = int_to_ptr.vmem [resolvable:$true] %s170_s4  ;;  %s169_s1 = int_to_ptr.hbm [resolvable:$true] %s168_s1 }
  0x3b   : > { %s159_s14 = scalar_lea.sflag [#allocation3], %s158_s12  ;;  %s1797_s20 = smov 4  }
  0x3c   : > { %s1798_s6 = smov 64   ;;  %s848_s3 = sshll.u32 %s1324_s23, 2 }
  0x3d   : > { %913 = dma.hbm_to_vmem [thread:$0]  (!%p911_p6), %s169_s1, 320, %s171_s4, %s159_s14, %s1798_s6, %s1798_s6, %s1797_s20  }
  0x3e   : > { %s210_s30 = scalar_lea.hbm %s1750_s2, %s848_s3  ;;  %s206_s25 = scalar_lea.vmem [#allocation7], %s847_s18 }
  0x3f   : > { %s214_s13 = sshll.u32 %s206_s25, 4  ;;  %s212_s28 = sshll.u32 %s210_s30, 4  ;;  %s215_s13 = int_to_ptr.vmem [resolvable:$true] %s214_s13  ;;  %s213_s28 = int_to_ptr.hbm [resolvable:$true] %s212_s28 }
  0x40   : > { %919 = dma.hbm_to_vmem [thread:$0]  (!%p1476_p10), %s213_s28, 64, %s215_s13, %s1482_s27  }
  0x41   : > { %223 = sbr.rel (%p1490_p13) target bundleno = 1008 (0x3f0), region = 32  ;;  %s225_s12 = sand.u32 (!%p1490_p13), 1, %s1308_s19  }
  0x42   : > { %s901_s7 = smul.u32 (!%p1490_p13), 20, %s225_s12  ;;  %s226_s1 = scalar_lea.sflag (!%p1490_p13), [#allocation3], %s225_s12 }
  0x44   : > { %s229_s14 = scalar_lea.vmem (!%p1490_p13), [#allocation2], %s901_s7 }
  0x46   : > { %1267 = dma.done.wait (%p1513_p11), %s226_s1, 320  }
  0x47   : > { %1269 = vsyncadd (%p1513_p11), %s226_s1, 4294966976  ;;  %s235_s17 = sand.u32 1, %s1425_s26   ;;  %s237_s20 = sand.u32 1, %s1296_s16  }
  0x48   : > { %s850_s24 = sshll.u32 %s237_s20, 4  ;;  %s236_s25 = scalar_lea.sflag [#allocation6], %s235_s17 }
  0x49   : > { %s239_s6 = scalar_lea.vmem [#allocation5], %s850_s24  ;;  %p1799_p5 = scmp.ne.s32.totalorder %s1782_s5, 0 }
  0x4b   : > { %1271 = dma.done.wait (%p1799_p5), %s236_s25, 320  }
  0x4c   : > { %1273 = vsyncadd (%p1799_p5), %s236_s25, 4294966976  ;;  %v292_v0 = vld [vmem:[%s229_s14 + $0x10] sm:$0xf]  ;;  %vm325_vm0 = vcmask 1043456   ;;  %v896_v4 = vld [vmem:[%s229_s14 + $0x8] sm:$0xff]  ;;  %vm318_vm1 = vcmask 326656   ;;  %v538_v61 = vlaneseq }
  0x4d   : > { %v312_v1 = vunpack.c.l.b16 %v292_v0  ;;  %v895_v5 = vld [vmem:[%s229_s14] sm:$0xff]  ;;  %v894_v7 = vld [vmem:[%s239_s6 + $0x8] sm:$0xff]  ;;  %s851_s26 = sshll.u32 %s237_s20, 2  ;;  %vm369_vm2 = vcmask 64512   ;;  %s1800_s8 = sld [smem:[#allocation13_spill]] }
  0x4e   : > { %v893_v6 = vld [vmem:[%s239_s6] sm:$0xff]  ;;  %s249_s5 = scalar_lea.vmem [#allocation7], %s851_s26  ;;  %v539_v63 = vand.u32 127, %v538_v61  ;;  %s1801_s27 = sld [smem:[#allocation17_spill]] }
  0x4f   : > { %v315_v2 = vpack.c.b16 %v312_v1, %v312_v1  ;;  %v352_v9 = vld [vmem:[%s249_s5] sm:$0xf]  ;;  %s888_s4 = sshll.u32 %s1320_s22, 2  ;;  %s1802_s3 = sld [smem:[#allocation27_spill]] }
  0x50   : > { %vm540_vm3 = vcmp.lt.s32.totalorder %v539_v63, 64 }
  0x51   : > { %v327_v3 = vsel %vm325_vm0, %v315_v2, 0 }
  0x52   : > { %334 = vmatpush.bf16.msra.mxu0 %v327_v3 }
  0x53   : > { %s280_s9 = sand.u32 1, %s1800_s8  }
  0x54   : > { %s706_s29 = sadd.s32 %s1801_s27, %s888_s4  ;;  %s852_s10 = sshll.u32 %s280_s9, 3 }
  0x55   : > { %s889_s18 = sshll.u32 %s706_s29, 3  ;;  %s282_s13 = scalar_lea.vmem [#allocation8], %s852_s10 }
  0x56   : > { %335 = vmatpush.bf16.msra.mxu0 %v896_v4  ;;  %s708_s30 = scalar_lea.hbm %s1802_s3, %s889_s18  ;;  %s710_s28 = sshll.u32 %s282_s13, 4  ;;  %s711_s28 = int_to_ptr.vmem [resolvable:$true] %s710_s28 }
  0x57   : > { %s712_s12 = sshll.u32 %s708_s30, 4  ;;  %s696_s22 = scalar_lea.sflag [#allocation4], %s280_s9  ;;  %s713_s12 = int_to_ptr.hbm [resolvable:$true] %s712_s12 }
  0x58   : > { %s1196_s7 = sshra.s32 %s713_s12, 4  ;;  %s1202_s20 = scalar_lea.hbm %s1802_s3, 64  ;;  %s1197_s7 = int_to_ptr.hbm [resolvable:$true] %s1196_s7 }
  0x59   : > { %s1198_s1 = scalar_lea.hbm %s1197_s7, 8  ;;  %p1203_p7 = scmp.lt.s32.totalorder %s1197_s7, %s1802_s3 }
  0x5a   : > { %336 = vmatpush.bf16.msra.mxu0 %v895_v5  ;;  %p1199_p9 = scmp.ne.s32.totalorder %s1197_s7, %s1198_s1  ;;  %p1204_p11 = scmp.lt.s32.totalorder %s1202_s20, %s1198_s1 }
  0x5c   : > { %p1200_p10 = pnand %p1199_p9, %p1528_p8  ;;  %p1205_p0 = por %p1204_p11, %p1203_p7 }
  0x5d   : > { %869 = vmatmul.msk.bf16.vlgmr.msra.gmra.mxu0 %vm318_vm1, %v893_v6 }
  0x5e   : > { %p1201_p13 = pneg %p1200_p10 }
  0x60   : > { %p1206_p12 = pnand %p1205_p0, %p1201_p13 }
  0x6d   : > { %870 = vmatmul.msk.bf16.gmra.mxu0 %vm318_vm1, %v894_v7 }
  0xda   : > { %v338_v8 = vpop.f32.mrf.mxu0 }
  0xdb   : > { %v348_v10 = vpack.c.bf16 %v338_v8, %v338_v8 }
  0xdd   : > { %1041 = vxpose.binary.xlu0.c.b16.start.end [1/2] (short) %v352_v9, %v348_v10, 128  ;;  %v395_v11 = vsel %vm325_vm0, %v348_v10, 0 }
  0xde   : > { %404 = vmatpush.bf16.msra.mxu1 %v395_v11  ;;  %897 = vmatpush.bf16.msra.mxu3 %v395_v11 }
  0xe2   : > { %v340_v12 = vpop.f32.mrf.mxu0 }
  0xe3   : > { %v349_v13 = vpack.c.bf16 %v340_v12, %v340_v12 }
  0xe5   : > { %v487_v14 = vsel %vm325_vm0, %v349_v13, 0 }
  0xe6   : > { %496 = vmatpush.bf16.msrb.mxu0 %v487_v14  ;;  %898 = vmatpush.bf16.msra.mxu2 %v487_v14 }
  0xea   : > { %v343_v25 = vpop.f32.mrf.mxu0 }
  0xeb   : > { %v350_v26 = vpack.c.bf16 %v343_v25, %v343_v25 }
  0xed   : > { %v1590_v29 = vunpack.c.l.b16 %v350_v26 }
  0xf2   : > { %v345_v28 = vpop.f32.mrf.mxu0 }
  0xf3   : > { %v351_v30 = vpack.c.bf16 %v345_v28, %v345_v28 }
  0xf5   : > { %v1592_v31 = vunpack.c.l.b16 %v351_v30 }
  0xf7   : > { %v675_v32 = vpack.c.b16 %v1592_v31, %v1590_v29 }
 0x189   : > { %v1042_v15 = vpop.trf.xlu0 }
 0x18a   : > { %879 = vmatmul.msk.bf16.vlgmr.msrb.gmra.mxu0 %vm369_vm2, %v1042_v15 }
 0x191   : > { %v1043_v16 = vpop.trf.xlu0 }
 0x192   : > { %871 = vmatmul.msk.bf16.vlgmr.msra.gmra.mxu1 %vm369_vm2, %v1043_v16 }
 0x199   : > { %v1044_v17 = vpop.trf.xlu0 }
 0x19a   : > { %880 = vmatmul.msk.bf16.gmra.mxu0 %vm369_vm2, %v1044_v17 }
 0x1a1   : > { %v1045_v18 = vpop.trf.xlu0 }
 0x1a2   : > { %872 = vmatmul.msk.bf16.gmra.mxu1 %vm369_vm2, %v1045_v18 }
 0x1a9   : > { %v1046_v19 = vpop.trf.xlu0 }
 0x1aa   : > { %881 = vmatmul.msk.bf16.vlgmr.msra.gmra.mxu2 %vm369_vm2, %v1046_v19 }
 0x1b1   : > { %v1047_v20 = vpop.trf.xlu0 }
 0x1b2   : > { %873 = vmatmul.msk.bf16.gmra.mxu1 %vm369_vm2, %v1047_v20 }
 0x1b9   : > { %v1048_v21 = vpop.trf.xlu0 }
 0x1ba   : > { %882 = vmatmul.msk.bf16.gmra.mxu2 %vm369_vm2, %v1048_v21 }
 0x1c1   : > { %v1049_v22 = vpop.trf.xlu0 }
 0x1c2   : > { %874 = vmatmul.msk.bf16.gmra.mxu1 %vm369_vm2, %v1049_v22 }
 0x1c9   : > { %v1050_v23 = vpop.trf.xlu0 }
 0x1ca   : > { %883 = vmatmul.msk.bf16.gmra.mxu2 %vm369_vm2, %v1050_v23 }
 0x1d1   : > { %v1051_v24 = vpop.trf.xlu0 }
 0x1d2   : > { %875 = vmatmul.msk.bf16.gmra.mxu1 %vm369_vm2, %v1051_v24 }
 0x1d9   : > { %v1052_v27 = vpop.trf.xlu0 }
 0x1da   : > { %884 = vmatmul.msk.bf16.gmra.mxu2 %vm369_vm2, %v1052_v27 }
 0x1e1   : > { %v1053_v33 = vpop.trf.xlu0 }
 0x1e2   : > { %876 = vmatmul.msk.bf16.gmra.mxu1 %vm369_vm2, %v1053_v33 }
 0x1e9   : > { %v1054_v34 = vpop.trf.xlu0 }
 0x1ea   : > { %885 = vmatmul.msk.bf16.gmra.mxu2 %vm369_vm2, %v1054_v34 }
 0x1f1   : > { %v1055_v35 = vpop.trf.xlu0 }
 0x1f2   : > { %877 = vmatmul.msk.bf16.vlgmr.msra.gmra.mxu3 %vm369_vm2, %v1055_v35 }
 0x1f9   : > { %v1056_v36 = vpop.trf.xlu0 }
 0x1fa   : > { %886 = vmatmul.msk.bf16.gmra.mxu2 %vm369_vm2, %v1056_v36 }
 0x201   : > { %v1057_v37 = vpop.trf.xlu0 }
 0x202   : > { %878 = vmatmul.msk.bf16.gmra.mxu3 %vm369_vm2, %v1057_v37 }
 0x207   : > { %v498_v14 = vpop.f32.mrf.mxu0 }
 0x20f   : > { %v1601_v38 = vpop.f32.mrf.mxu1  ;;  %v500_v21 = vpop.f32.mrf.mxu0 }
 0x210   : > { %v499_v34 = vadd.f32 %v498_v14, %v1601_v38 }
 0x212   : > { %v1646_v36 = vsel %vm540_vm3, %v499_v34, -1e+30 }
 0x217   : > { %v1603_v39 = vpop.f32.mrf.mxu1  ;;  %v503_v26 = vpop.f32.mrf.mxu0 }
 0x21f   : > { %v411_v40 = vpop.f32.mrf.mxu1 }
 0x220   : > { %v504_v27 = vadd.f32 %v503_v26, %v411_v40  ;;  %v505_v40 = vpop.f32.mrf.mxu0 }
 0x222   : > { %v1637_v33 = vsel %vm540_vm3, %v504_v27, -1e+30 }
 0x227   : > { %v1605_v41 = vpop.f32.mrf.mxu1 }
 0x22d   : > { %v508_v42 = vpop.f32.mrf.mxu2 }
 0x22f   : > { %v416_v43 = vpop.f32.mrf.mxu1 }
 0x230   : > { %v509_v44 = vadd.f32 %v508_v42, %v416_v43  ;;  %v506_v42 = vadd.f32 %v505_v40, %v1605_v41  ;;  %v501_v43 = vadd.f32 %v500_v21, %v1603_v39 }
 0x232   : > { %v1630_v25 = vsel %vm540_vm3, %v509_v44, -1e+30  ;;  %v1657_v38 = vsel %vm540_vm3, %v506_v42, -1e+30  ;;  %v1662_v44 = vsel %vm540_vm3, %v501_v43, -1e+30 }
 0x235   : > { %v510_v45 = vpop.f32.mrf.mxu2 }
 0x237   : > { %v418_v46 = vpop.f32.mrf.mxu1 }
 0x238   : > { %v1607_v47 = vadd.f32 %v510_v45, %v418_v46 }
 0x23a   : > { %v1652_v37 = vsel %vm540_vm3, %v1607_v47, -1e+30 }
 0x23d   : > { %v513_v48 = vpop.f32.mrf.mxu2 }
 0x23f   : > { %v421_v49 = vpop.f32.mrf.mxu1 }
 0x240   : > { %v514_v17 = vadd.f32 %v513_v48, %v421_v49 }
 0x242   : > { %v1625_v20 = vsel %vm540_vm3, %v514_v17, -1e+30 }
 0x245   : > { %v515_v50 = vpop.f32.mrf.mxu2 }
 0x247   : > { %v423_v51 = vpop.f32.mrf.mxu1 }
 0x248   : > { %v516_v52 = vadd.f32 %v515_v50, %v423_v51 }
 0x24a   : > { %v1643_v35 = vsel %vm540_vm3, %v516_v52, -1e+30 }
 0x24d   : > { %v518_v53 = vpop.f32.mrf.mxu2 }
 0x24f   : > { %v426_v57 = vpop.f32.mrf.mxu1 }
 0x250   : > { %v519_v10 = vadd.f32 %v518_v53, %v426_v57 }
 0x252   : > { %v1620_v16 = vsel %vm540_vm3, %v519_v10, -1e+30 }
 0x255   : > { %v520_v54 = vpop.f32.mrf.mxu2 }
 0x257   : > { %v428_v60 = vpop.f32.mrf.mxu1 }
 0x258   : > { %v521_v28 = vadd.f32 %v520_v54, %v428_v60 }
 0x25a   : > { %v1634_v30 = vsel %vm540_vm3, %v521_v28, -1e+30 }
 0x25d   : > { %v523_v55 = vpop.f32.mrf.mxu2 }
 0x25f   : > { %v431_v3 = vpop.f32.mrf.mxu1 }
 0x260   : > { %v524_v5 = vadd.f32 %v523_v55, %v431_v3 }
 0x262   : > { %v1615_v9 = vsel %vm540_vm3, %v524_v5, -1e+30 }
 0x265   : > { %v525_v56 = vpop.f32.mrf.mxu2 }
 0x267   : > { %v433_v22 = vpop.f32.mrf.mxu1 }
 0x268   : > { %v526_v23 = vadd.f32 %v525_v56, %v433_v22 }
 0x26a   : > { %v554_v24 = vsel %vm540_vm3, %v526_v23, -1e+30 }
 0x26d   : > { %v528_v58 = vpop.f32.mrf.mxu2 }
 0x275   : > { %v436_v59 = vpop.f32.mrf.mxu3  ;;  %v530_v62 = vpop.f32.mrf.mxu2 }
 0x276   : > { %v529_v18 = vadd.f32 %v528_v58, %v436_v59 }
 0x278   : > { %v555_v19 = vsel %vm540_vm3, %v529_v18, -1e+30 }
 0x27d   : > { %v438_v0 = vpop.f32.mrf.mxu3  ;;  %v533_v4 = vpop.f32.mrf.mxu2 }
 0x27e   : > { %v531_v1 = vadd.f32 %v530_v62, %v438_v0 }
 0x280   : > { %v1610_v2 = vsel %vm540_vm3, %v531_v1, -1e+30 }
 0x281   : > { %585 = vmax.xlane.f32.xlu2 %v1610_v2 }
 0x285   : > { %v441_v6 = vpop.f32.mrf.mxu3  ;;  %v535_v11 = vpop.f32.mrf.mxu2 }
 0x286   : > { %v534_v7 = vadd.f32 %v533_v4, %v441_v6 }
 0x288   : > { %v557_v8 = vsel %vm540_vm3, %v534_v7, -1e+30 }
 0x289   : > { %587 = vmax.xlane.f32.xlu0 %v557_v8  ;;  %579 = vmax.xlane.f32.xlu2 %v1615_v9 }
 0x28d   : > { %v443_v12 = vpop.f32.mrf.mxu3 }
 0x28e   : > { %v536_v13 = vadd.f32 %v535_v11, %v443_v12 }
 0x290   : > { %v558_v15 = vsel %vm540_vm3, %v536_v13, -1e+30 }
 0x291   : > { %589 = vmax.xlane.f32.xlu1 %v558_v15  ;;  %575 = vmax.xlane.f32.xlu2 %v1620_v16 }
 0x299   : > { %583 = vmax.xlane.f32.xlu1 %v555_v19  ;;  %571 = vmax.xlane.f32.xlu2 %v1625_v20 }
 0x2a1   : > { %581 = vmax.xlane.f32.xlu1 %v554_v24  ;;  %567 = vmax.xlane.f32.xlu2 %v1630_v25 }
 0x2a9   : > { %577 = vmax.xlane.f32.xlu1 %v1634_v30  ;;  %563 = vmax.xlane.f32.xlu2 %v1637_v33 }
 0x2b1   : > { %573 = vmax.xlane.f32.xlu1 %v1643_v35  ;;  %559 = vmax.xlane.f32.xlu2 %v1646_v36 }
 0x2b9   : > { %569 = vmax.xlane.f32.xlu1 %v1652_v37 }
 0x2c1   : > { %565 = vmax.xlane.f32.xlu1 %v1657_v38 }
 0x2c9   : > { %561 = vmax.xlane.f32.xlu1 %v1662_v44 }
 0x2f4   : > { %v586_v45 = vpop.xlane.xlu2 %585 }
 0x2f5   : > { %v604_v56 = vsub.f32 %v1610_v2, %v586_v45 }
 0x2fc   : > { %v588_v46 = vpop.xlane.xlu0 %587  ;;  %v580_v51 = vpop.xlane.xlu2 %579 }
 0x2fd   : > { %v605_v48 = vsub.f32 %v557_v8, %v588_v46  ;;  %v601_v3 = vsub.f32 %v1615_v9, %v580_v51 }
 0x304   : > { %v590_v47 = vpop.xlane.xlu1 %589  ;;  %v576_v60 = vpop.xlane.xlu2 %575 }
 0x305   : > { %v606_v49 = vsub.f32 %v558_v15, %v590_v47  ;;  %v599_v15 = vsub.f32 %v1620_v16, %v576_v60 }
 0x307   : > { %v614_v50 = vpack.c.bf16 %v606_v49, %v605_v48 }
 0x309   : > { %v629_v41 = vunpack.c.l.bf16 %v614_v50  ;;  %v630_v52 = vunpack.c.h.bf16 %v614_v50 }
 0x30b   : > { %v659_v53 = vmul.f32 1.442695, %v629_v41  ;;  %v661_v54 = vmul.f32 1.442695, %v630_v52 }
 0x30c   : > { %v584_v55 = vpop.xlane.xlu1 %583  ;;  %v572_v13 = vpop.xlane.xlu2 %571 }
 0x30d   : > { %1058 = vpow2.f32 %v659_v53  ;;  %v603_v39 = vsub.f32 %v555_v19, %v584_v55  ;;  %v597_v28 = vsub.f32 %v1625_v20, %v572_v13 }
 0x30e   : > { %1060 = vpow2.f32 %v661_v54 }
 0x30f   : > { %v613_v57 = vpack.c.bf16 %v604_v56, %v603_v39 }
 0x311   : > { %v627_v58 = vunpack.c.l.bf16 %v613_v57  ;;  %v628_v59 = vunpack.c.h.bf16 %v613_v57 }
 0x313   : > { %v1059_v61 = vpop.eup %1058  ;;  %v655_v62 = vmul.f32 1.442695, %v627_v58  ;;  %v657_v63 = vmul.f32 1.442695, %v628_v59 }
 0x314   : > { %v1061_v0 = vpop.eup %1060  ;;  %v582_v1 = vpop.xlane.xlu1 %581 }
 0x315   : > { %1062 = vpow2.f32 %v655_v62  ;;  %v602_v4 = vsub.f32 %v554_v24, %v582_v1  ;;  %v670_v5 = vpack.c.bf16 %v1061_v0, %v1059_v61  ;;  %v568_v40 = vpop.xlane.xlu2 %567 }
 0x316   : > { %1064 = vpow2.f32 %v657_v63  ;;  %v595_v50 = vsub.f32 %v1630_v25, %v568_v40 }
 0x317   : > { %v612_v6 = vpack.c.bf16 %v602_v4, %v601_v3  ;;  %677 = vmatpush.bf16.xpose.msrb.mxu3 %v670_v5 }
 0x319   : > { %v625_v2 = vunpack.c.l.bf16 %v612_v6  ;;  %v626_v7 = vunpack.c.h.bf16 %v612_v6 }
 0x31b   : > { %v1063_v8 = vpop.eup %1062  ;;  %v651_v10 = vmul.f32 1.442695, %v625_v2  ;;  %v653_v11 = vmul.f32 1.442695, %v626_v7 }
 0x31c   : > { %v1065_v12 = vpop.eup %1064  ;;  %v578_v14 = vpop.xlane.xlu1 %577 }
 0x31d   : > { %1066 = vpow2.f32 %v651_v10  ;;  %v600_v17 = vsub.f32 %v1634_v30, %v578_v14  ;;  %v669_v9 = vpack.c.bf16 %v1065_v12, %v1063_v8  ;;  %v564_v41 = vpop.xlane.xlu2 %563 }
 0x31e   : > { %1068 = vpow2.f32 %v653_v11  ;;  %v593_v58 = vsub.f32 %v1637_v33, %v564_v41 }
 0x31f   : > { %v611_v18 = vpack.c.bf16 %v600_v17, %v599_v15  ;;  %678 = vmatpush.bf16.xpose.msrb.mxu3 %v669_v9 }
 0x321   : > { %v623_v19 = vunpack.c.l.bf16 %v611_v18  ;;  %v624_v21 = vunpack.c.h.bf16 %v611_v18 }
 0x323   : > { %v1067_v22 = vpop.eup %1066  ;;  %v647_v23 = vmul.f32 1.442695, %v623_v19  ;;  %v649_v24 = vmul.f32 1.442695, %v624_v21 }
 0x324   : > { %v1069_v26 = vpop.eup %1068  ;;  %v574_v27 = vpop.xlane.xlu1 %573 }
 0x325   : > { %1070 = vpow2.f32 %v647_v23  ;;  %v598_v34 = vsub.f32 %v1643_v35, %v574_v27  ;;  %v668_v16 = vpack.c.bf16 %v1069_v26, %v1067_v22  ;;  %v560_v62 = vpop.xlane.xlu2 %559 }
 0x326   : > { %1072 = vpow2.f32 %v649_v24  ;;  %v591_v5 = vsub.f32 %v1646_v36, %v560_v62 }
 0x327   : > { %v610_v30 = vpack.c.bf16 %v598_v34, %v597_v28  ;;  %679 = vmatpush.bf16.xpose.msrb.mxu3 %v668_v16 }
 0x329   : > { %v621_v42 = vunpack.c.l.bf16 %v610_v30  ;;  %v622_v43 = vunpack.c.h.bf16 %v610_v30 }
 0x32b   : > { %v1071_v45 = vpop.eup %1070  ;;  %v643_v46 = vmul.f32 1.442695, %v621_v42  ;;  %v645_v47 = vmul.f32 1.442695, %v622_v43 }
 0x32c   : > { %v1073_v48 = vpop.eup %1072  ;;  %v570_v49 = vpop.xlane.xlu1 %569 }
 0x32d   : > { %1074 = vpow2.f32 %v643_v46  ;;  %v596_v20 = vsub.f32 %v1652_v37, %v570_v49  ;;  %v667_v51 = vpack.c.bf16 %v1073_v48, %v1071_v45 }
 0x32e   : > { %1076 = vpow2.f32 %v645_v47 }
 0x32f   : > { %v609_v35 = vpack.c.bf16 %v596_v20, %v595_v50  ;;  %680 = vmatpush.bf16.xpose.msrb.mxu3 %v667_v51 }
 0x331   : > { %v619_v52 = vunpack.c.l.bf16 %v609_v35  ;;  %v620_v53 = vunpack.c.h.bf16 %v609_v35 }
 0x333   : > { %v1075_v54 = vpop.eup %1074  ;;  %v639_v55 = vmul.f32 1.442695, %v619_v52  ;;  %v641_v56 = vmul.f32 1.442695, %v620_v53 }
 0x334   : > { %v1077_v39 = vpop.eup %1076  ;;  %v566_v57 = vpop.xlane.xlu1 %565 }
 0x335   : > { %1078 = vpow2.f32 %v639_v55  ;;  %v594_v25 = vsub.f32 %v1657_v38, %v566_v57  ;;  %v666_v59 = vpack.c.bf16 %v1077_v39, %v1075_v54 }
 0x336   : > { %1080 = vpow2.f32 %v641_v56 }
 0x337   : > { %v608_v37 = vpack.c.bf16 %v594_v25, %v593_v58  ;;  %681 = vmatpush.bf16.xpose.msrb.mxu3 %v666_v59 }
 0x339   : > { %v617_v60 = vunpack.c.l.bf16 %v608_v37  ;;  %v618_v61 = vunpack.c.h.bf16 %v608_v37 }
 0x33b   : > { %v1079_v63 = vpop.eup %1078  ;;  %v635_v0 = vmul.f32 1.442695, %v617_v60  ;;  %v637_v1 = vmul.f32 1.442695, %v618_v61 }
 0x33c   : > { %v1081_v3 = vpop.eup %1080  ;;  %v562_v4 = vpop.xlane.xlu1 %561 }
 0x33d   : > { %1082 = vpow2.f32 %v635_v0  ;;  %v592_v33 = vsub.f32 %v1662_v44, %v562_v4  ;;  %v665_v6 = vpack.c.bf16 %v1081_v3, %v1079_v63 }
 0x33e   : > { %1084 = vpow2.f32 %v637_v1 }
 0x33f   : > { %v607_v38 = vpack.c.bf16 %v592_v33, %v591_v5  ;;  %682 = vmatpush.bf16.xpose.msrb.mxu3 %v665_v6 }
 0x341   : > { %v615_v2 = vunpack.c.l.bf16 %v607_v38  ;;  %v616_v7 = vunpack.c.h.bf16 %v607_v38 }
 0x343   : > { %v1083_v8 = vpop.eup %1082  ;;  %v631_v10 = vmul.f32 1.442695, %v615_v2  ;;  %v633_v11 = vmul.f32 1.442695, %v616_v7 }
 0x344   : > { %v1085_v12 = vpop.eup %1084 }
 0x345   : > { %1086 = vpow2.f32 %v631_v10  ;;  %v664_v13 = vpack.c.bf16 %v1085_v12, %v1083_v8 }
 0x346   : > { %1088 = vpow2.f32 %v633_v11 }
 0x347   : > { %683 = vmatpush.bf16.xpose.msrb.mxu3 %v664_v13 }
 0x34b   : > { %v1087_v36 = vpop.eup %1086 }
 0x34c   : > { %v1089_v14 = vpop.eup %1088 }
 0x34d   : > { %v663_v44 = vpack.c.bf16 %v1089_v14, %v1087_v36 }
 0x34f   : > { %684 = vmatpush.bf16.xpose.msrb.mxu3 %v663_v44 }
 0x356   : > { %685 = vmatmul.bf16.vlgmr.msrb.gmra.mxu3 %v675_v32 }
 0x3d9   : > { %v686_v15 = vpop.f32.mrf.mxu3 }
 0x3e1   : > { %v688_v17 = vpop.f32.mrf.mxu3 }
 0x3e2   : > { %1090 = vrcp.f32 %v688_v17 }
 0x3e8   : > { %v1091_v9 = vpop.eup %1090 }
 0x3e9   : > { %v692_v18 = vperm.slane %v1091_v9, 0 }
 0x3eb   : > { %v693_v29 = vmul.f32 %v692_v18, %v686_v15 }
 0x3ed   : > { %694 = vst [vmem:[%s282_s13] sm:$0xff] %v693_v29 }
 0x3ee   : > { %1209 = shalt.err (!%p1206_p12)
}
 0x3ef   : > { %908 = dma.vmem_to_hbm [thread:$0]  (%p1528_p8), %s711_s28, 128, %s713_s12, %s696_s22  }
 0x3f0 PF: > { %s1803_s6 = sld [smem:[#allocation19_spill]] }
 0x3f1   : > { %s1804_s26 = sld [smem:[#allocation12_spill]] }
 0x3f6   : > { %p925_p1 = scmp.ge.s32.totalorder %s1803_s6, 2 }
 0x3f7   : > { %s724_s8 = sand.u32 1, %s1804_s26  }
 0x3f8   : > { %p921_p3 = pnand %p925_p1, %p1538_p2  ;;  %s725_s27 = scalar_lea.sflag [#allocation4], %s724_s8 }
 0x3fa   : > { %p922_p4 = pneg %p921_p3 }
 0x3fc   : > { %1275 = dma.done.wait (%p922_p4), %s725_s27, 128  }
 0x3fd   : > { %1277 = vsyncadd (%p922_p4), %s725_s27, 4294967168  ;;  %s22_s25 = sadd.s32 1, %s1803_s6   ;;  %s1807_s12 = sld [smem:[#allocation13_spill]] }
 0x3fe   : > { %p1701_p6 = scmp.ge.s32.totalorder %s22_s25, 10   ;;  %s1808_s13 = sld [smem:[#allocation14_spill]] }
 0x3ff   : > { %s1809_s14 = sld [smem:[#allocation24_spill]]  ;;  %s1817_s15 = smov %s1296_s16 }
 0x400   : > { %s1810_s21 = sld [smem:[#allocation15_spill]]  ;;  %s1819_s18 = smov %s1308_s19 }
 0x401   : > { %s1811_s17 = sld [smem:[#allocation21_spill]] }
 0x402   : > { %s1812_s9 = sld [smem:[#allocation16_spill]] }
 0x403   : > { %s1813_s20 = sld [smem:[#allocation23_spill]] }
 0x404   : > { %s1814_s22 = sld [smem:[#allocation18_spill]] }
 0x405   : > { %s1815_s29 = sld [smem:[#allocation20_spill]] }
 0x406   : > { %s1816_s24 = sld [smem:[#allocation22_spill]]  ;;  %s1818_s16 = smov %s1810_s21 }
 0x407   : > { %s1821_s21 = smov %s1324_s23  ;;  %21 = sbr.rel (!%p1701_p6) target bundleno = 15 (0xf), region = 101 }
 0x408   : > { %s1820_s19 = smov %s1812_s9 }
 0x40b   : > { %s1822_s23 = smov %s1815_s29 }
 0x40c   :  { %731 = vsyncpa [#allocation3], 1 }
 0x40d   :  { %733 = vsyncpa [#allocation3 + $0x1], 1 }
 0x40e   :  { %734 = vsyncpa [#allocation6], 1 }
 0x40f   :  { %736 = vsyncpa [#allocation6 + $0x1], 1 }
 0x410   :  { %737 = vsyncpa [#allocation4], 1 }
 0x411   :  { %739 = vsyncpa [#allocation4 + $0x1], 1 }

</bundles_post_ra>
